<compile_context>
chip_gen: v6e
topology: v6e:2x2x1
jax: 0.10.0
libtpu: 0.0.40
codegen_flags: <defaults>
</compile_context>

<pallas_src>
import functools

import jax
import jax.numpy as jnp
from jax.experimental import pallas as pl
from jax.experimental.pallas import tpu as pltpu


def _round_up(v, m):
    return (v + m - 1) // m * m


def _pick_tile(n_pad, candidates):
    for c in candidates:
        if n_pad % c == 0:
            return c
    return 128


def _vmem_limit_bytes():
    # Per-generation VMEM budget: v7x has 64 MiB physical VMEM per TensorCore;
    # v5e / v6e have 128 MiB.
    try:
        kind = jax.devices()[0].device_kind.lower()
    except Exception:
        kind = ""
    if "v7" in kind:
        return 48 * 1024 * 1024
    return 100 * 1024 * 1024


# --------------------------------------------------------------------------
# Phase 1: A' @ x  (GIN sum aggregation with folded self term), Linear1+ReLU,
#          per-row-tile BatchNorm partial statistics.
# --------------------------------------------------------------------------
def _gin_phase1_kernel(adj_ref, x_ref, w1_ref, b1_ref,
                       z_ref, stats_ref, acc_ref,
                       *, n_real, n_pad, tm, tk, h_pad):
    i = pl.program_id(0)            # destination-node row tile
    k = pl.program_id(1)            # source-node reduction tile
    nk = pl.num_programs(1)

    @pl.when(k == 0)
    def _():
        acc_ref[...] = jnp.zeros_like(acc_ref)

    # bf16 adjacency tile  @  bf16 resident-x slice  ->  f32 accumulator
    k0 = pl.multiple_of(k * tk, tk)
    acc_ref[...] += jnp.dot(adj_ref[...], x_ref[pl.ds(k0, tk), :],
                            preferred_element_type=jnp.float32)

    # reduction finished for this row tile: Linear1 + ReLU + BN partials
    @pl.when(k == nk - 1)
    def _():
        h = acc_ref[...].astype(jnp.bfloat16)                     # (tm, F)
        z = jnp.dot(h, w1_ref[...], preferred_element_type=jnp.float32)
        z = jnp.maximum(z + b1_ref[...], 0.0)                     # (tm, H)

        if n_real < n_pad:
            # Zero non-existent padded rows so they neither pollute the batch
            # statistics nor leave garbage in z.
            rows = (i * tm
                    + jax.lax.broadcasted_iota(jnp.int32, (tm, 1), 0))
            z = jnp.where(rows < n_real, z, 0.0)

        s = jnp.sum(z, axis=0, keepdims=True)                     # (1, H)
        ss = jnp.sum(z * z, axis=0, keepdims=True)                # (1, H)
        stats_ref[...] = jnp.concatenate(
            [s, ss, jnp.zeros((6, h_pad), jnp.float32)], axis=0)  # (8, H)
        z_ref[...] = z.astype(z_ref.dtype)


# --------------------------------------------------------------------------
# Phase 2: BatchNorm normalize (folded into scale/shift) + Linear2.
# --------------------------------------------------------------------------
def _gin_phase2_kernel(z_ref, scale_ref, shift_ref, w2_ref, b2_ref, out_ref):
    zn = z_ref[...].astype(jnp.float32) * scale_ref[...] + shift_ref[...]
    out = jnp.dot(zn.astype(jnp.bfloat16), w2_ref[...],
                  preferred_element_type=jnp.float32)
    out_ref[...] = (out + b2_ref[...]).astype(out_ref.dtype)


def spectral_normalize(w, n_iter=8, eps=1e-12):
    """torch.nn.utils spectral_norm semantics: divide W by its largest singular
    value, estimated with power iteration (no SVD)."""
    w32 = w.astype(jnp.float32)

    def body(_, u):
        v = w32.T @ u
        v = v / (jnp.linalg.norm(v) + eps)
        u = w32 @ v
        u = u / (jnp.linalg.norm(u) + eps)
        return u

    u0 = jnp.full((w32.shape[0],), 1.0 / (w32.shape[0] ** 0.5), jnp.float32)
    u = jax.lax.fori_loop(0, n_iter, body, u0)
    v = w32.T @ u
    v = v / (jnp.linalg.norm(v) + eps)
    sigma = u @ (w32 @ v)
    return w / sigma


def gin_forward(x, edge_index, params, *, bn_eps=1e-5):
    """x: (N, nfeat) float32, edge_index: (2, E) int32 rows = (src, dst)."""
    n, nfeat = x.shape
    nhid = params["w2"].shape[0]

    # ---- lane-dense / tile-aligned padded sizes ----------------------------
    f_pad = _round_up(nfeat, 128)
    h_pad = _round_up(nhid, 128)
    n_pad = _round_up(n, 128)
    tm = _pick_tile(n_pad, (256, 128))                      # dst-row tile
    tk = _pick_tile(n_pad, (2048, 1024, 512, 256, 128))     # reduction tile
    tm2 = _pick_tile(n_pad, (512, 256, 128))                # phase-2 row tile
    ni = n_pad // tm

    # ---- dense adjacency (built directly in bf16) with GIN self term -------
    # A'[dst, src] = #edges(src->dst); A'[i, i] += (1 + eps), eps = 0, so
    # A' @ x = (1 + eps) * x_i + sum_{j in N(i)} x_j (GINConv sum aggregation).
    # Small integer counts are exact in bf16.
    src, dst = edge_index[0], edge_index[1]
    adj = jnp.zeros((n_pad, n_pad), jnp.bfloat16)
    adj = adj.at[dst, src].add(1.0)
    diag = jnp.arange(n, dtype=jnp.int32)
    adj = adj.at[diag, diag].add(1.0)

    xp = jnp.zeros((n_pad, f_pad), jnp.bfloat16).at[:n, :nfeat].set(
        x.astype(jnp.bfloat16))

    # ---- spectrally-normalized, pre-transposed, zero-padded bf16 weights ---
    w1 = spectral_normalize(params["w1"])     # (nhid, nfeat)
    w2 = spectral_normalize(params["w2"])     # (nhid, nhid)
    w1p = jnp.zeros((f_pad, h_pad), jnp.bfloat16).at[:nfeat, :nhid].set(
        w1.T.astype(jnp.bfloat16))
    w2p = jnp.zeros((h_pad, h_pad), jnp.bfloat16).at[:nhid, :nhid].set(
        w2.T.astype(jnp.bfloat16))

    def _row(v):
        return jnp.zeros((1, h_pad), jnp.float32).at[0, :nhid].set(v)

    b1p = _row(params["b1"])
    b2p = _row(params["b2"])
    gammap = _row(params["gamma"])
    betap = _row(params["beta"])

    vmem_limit = _vmem_limit_bytes()
    const = lambda i, k: (0, 0)

    # ------------------- phase 1 --------------------------------------------
    kernel1 = functools.partial(_gin_phase1_kernel, n_real=n, n_pad=n_pad,
                                tm=tm, tk=tk, h_pad=h_pad)
    z_pad, stats = pl.pallas_call(
        kernel1,
        out_shape=(jax.ShapeDtypeStruct((n_pad, h_pad), jnp.bfloat16),
                   jax.ShapeDtypeStruct((ni * 8, h_pad), jnp.float32)),
        grid_spec=pltpu.PrefetchScalarGridSpec(
            num_scalar_prefetch=0,
            grid=(ni, n_pad // tk),
            in_specs=[
                pl.BlockSpec((tm, tk), lambda i, k: (i, k)),      # A' tile
                pl.BlockSpec((n_pad, f_pad), const),              # x (resident)
                pl.BlockSpec((f_pad, h_pad), const),              # W1^T
                pl.BlockSpec((1, h_pad), const),                  # b1
            ],
            out_specs=(
                pl.BlockSpec((tm, h_pad), lambda i, k: (i, 0)),   # z tile
                pl.BlockSpec((8, h_pad), lambda i, k: (i, 0)),    # BN partials
            ),
            scratch_shapes=[pltpu.VMEM((tm, f_pad), jnp.float32)],
        ),
        compiler_params=pltpu.CompilerParams(
            dimension_semantics=("parallel", "arbitrary"),
            vmem_limit_bytes=vmem_limit,
        ),
    )(adj, xp, w1p, b1p)

    # ------------------- global BatchNorm statistics (tiny, plain JAX) ------
    stats = stats.reshape(ni, 8, h_pad)
    total_sum = stats[:, 0, :].sum(axis=0)
    total_sumsq = stats[:, 1, :].sum(axis=0)
    inv_n = 1.0 / float(n)
    mean = total_sum * inv_n
    var = jnp.maximum(total_sumsq * inv_n - mean * mean, 0.0)   # clamp cancellation
    inv_std = jax.lax.rsqrt(var + bn_eps)
    scale = (gammap[0] * inv_std)[None, :]                      # (1, h_pad)
    shift = (betap[0] - mean * gammap[0] * inv_std)[None, :]    # (1, h_pad)

    # ------------------- phase 2 --------------------------------------------
    const2 = lambda i: (0, 0)
    out_padded = pl.pallas_call(
        _gin_phase2_kernel,
        out_shape=jax.ShapeDtypeStruct((n_pad, h_pad), jnp.float32),
        grid_spec=pltpu.PrefetchScalarGridSpec(
            num_scalar_prefetch=0,
            grid=(n_pad // tm2,),
            in_specs=[
                pl.BlockSpec((tm2, h_pad), lambda i: (i, 0)),     # z tile
                pl.BlockSpec((1, h_pad), const2),                 # scale
                pl.BlockSpec((1, h_pad), const2),                 # shift
                pl.BlockSpec((h_pad, h_pad), const2),             # W2^T
                pl.BlockSpec((1, h_pad), const2),                 # b2
            ],
            out_specs=pl.BlockSpec((tm2, h_pad), lambda i: (i, 0)),
        ),
        compiler_params=pltpu.CompilerParams(
            dimension_semantics=("parallel",),
            vmem_limit_bytes=vmem_limit,
        ),
    )(z_pad, scale, shift, w2p, b2p)

    return out_padded[:n, :nhid]


def init_params(key, nfeat, nhid):
    k1, k2, k3, k4 = jax.random.split(key, 4)
    bound1 = 1.0 / (nfeat ** 0.5)
    bound2 = 1.0 / (nhid ** 0.5)
    return {
        "w1": jax.random.uniform(k1, (nhid, nfeat), jnp.float32, -bound1, bound1),
        "b1": jax.random.uniform(k2, (nhid,), jnp.float32, -bound1, bound1),
        "gamma": jnp.ones((nhid,), jnp.float32),
        "beta": jnp.zeros((nhid,), jnp.float32),
        "w2": jax.random.uniform(k3, (nhid, nhid), jnp.float32, -bound2, bound2),
        "b2": jax.random.uniform(k4, (nhid,), jnp.float32, -bound2, bound2),
    }


if __name__ == "__main__":
    N, NFEAT, NHID = 16, 16, 32

    key = jax.random.PRNGKey(0)
    kx, kp = jax.random.split(key)

    x = jax.random.normal(kx, (N, NFEAT), jnp.float32)

    # Deterministic ring graph with both directions (E = 2 * N edges)
    idx = jnp.arange(N, dtype=jnp.int32)
    src = jnp.concatenate([idx, (idx + 1) % N])
    dst = jnp.concatenate([(idx + 1) % N, idx])
    edge_index = jnp.stack([src, dst], axis=0)      # (2, 32)

    params = init_params(kp, NFEAT, NHID)

    out = gin_forward(x, edge_index, params)
    jax.block_until_ready(out)
    assert out.shape == (N, NHID)
    assert bool(jnp.all(jnp.isfinite(out)))
    print("KERNEL_OK")
</pallas_src>

<mosaic_0001>
module attributes {stable_mosaic.version = 11 : i64} {
  func.func @_gin_phase1_kernel(%arg0: i32, %arg1: i32, %arg2: memref<128x128xbf16, #tpu.memory_space<vmem>>, %arg3: memref<128x128xbf16, #tpu.memory_space<vmem>>, %arg4: memref<128x128xbf16, #tpu.memory_space<vmem>>, %arg5: memref<1x128xf32, #tpu.memory_space<vmem>>, %arg6: memref<128x128xbf16, #tpu.memory_space<vmem>>, %arg7: memref<8x128xf32, #tpu.memory_space<vmem>>, %arg8: memref<128x128xf32, #tpu.memory_space<vmem>>) attributes {dimension_semantics = [#tpu.dimension_semantics<parallel>, #tpu.dimension_semantics<arbitrary>], iteration_bounds = array<i64: 1, 1>, scalar_prefetch = 0 : i64, scratch_operands = 1 : i64, tpu.core_type = #tpu.core_type<tc>, window_params = [{transform_indices = @transform_0, window_bounds = array<i64: 128, 128>}, {pipeline_mode = #tpu.pipeline_mode<synchronous>, transform_indices = @transform_1, window_bounds = array<i64: 128, 128>}, {pipeline_mode = #tpu.pipeline_mode<synchronous>, transform_indices = @transform_2, window_bounds = array<i64: 128, 128>}, {pipeline_mode = #tpu.pipeline_mode<synchronous>, transform_indices = @transform_3, window_bounds = array<i64: 1, 128>}, {transform_indices = @transform_4, window_bounds = array<i64: 128, 128>}, {transform_indices = @transform_5, window_bounds = array<i64: 8, 128>}]} {
    %c0_i32 = arith.constant 0 : i32
    %0 = arith.cmpi eq, %arg1, %c0_i32 : i32
    %1 = arith.extui %0 : i1 to i32
    %c0_i32_0 = arith.constant 0 : i32
    %2 = arith.cmpi ne, %1, %c0_i32_0 : i32
    scf.if %2 {
      %cst_9 = arith.constant 0.000000e+00 : f32
      %15 = vector.broadcast %cst_9 : f32 to vector<128x128xf32>
      %c0_10 = arith.constant 0 : index
      %c0_11 = arith.constant 0 : index
      %16 = vector.load %arg8[%c0_10, %c0_11] : memref<128x128xf32, #tpu.memory_space<vmem>>, vector<128x128xf32>
      tpu.vector_store %arg8[%c0_10, %c0_11], %15 {strides = array<i32>} : memref<128x128xf32, #tpu.memory_space<vmem>>, vector<128x128xf32>,
    } else {
    }
    %c128_i32 = arith.constant 128 : i32
    %3 = arith.muli %arg1, %c128_i32 : i32
    %4 = tpu.assume_multiple %3, 128 : i32
    %c0 = arith.constant 0 : index
    %c0_1 = arith.constant 0 : index
    %5 = vector.load %arg8[%c0, %c0_1] : memref<128x128xf32, #tpu.memory_space<vmem>>, vector<128x128xf32>
    %c0_2 = arith.constant 0 : index
    %c0_3 = arith.constant 0 : index
    %6 = vector.load %arg2[%c0_2, %c0_3] : memref<128x128xbf16, #tpu.memory_space<vmem>>, vector<128x128xbf16>
    %7 = arith.index_cast %4 : i32 to index
    %c0_4 = arith.constant 0 : index
    %8 = vector.load %arg3[%7, %c0_4] : memref<128x128xbf16, #tpu.memory_space<vmem>>, vector<128x128xbf16>
    %cst = arith.constant dense<0.000000e+00> : vector<128x128xf32>
    %9 = tpu.matmul %6, %8, %cst {dimension_numbers = #tpu.dot_dimension_numbers<[1], [0], [0], [1], [0, 0, 1, 1], [], []>} : vector<128x128xbf16>, vector<128x128xbf16>, vector<128x128xf32> -> vector<128x128xf32>
    %10 = arith.addf %5, %9 : vector<128x128xf32>
    %c0_5 = arith.constant 0 : index
    %c0_6 = arith.constant 0 : index
    %11 = vector.load %arg8[%c0_5, %c0_6] : memref<128x128xf32, #tpu.memory_space<vmem>>, vector<128x128xf32>
    tpu.vector_store %arg8[%c0_5, %c0_6], %10 {strides = array<i32>} : memref<128x128xf32, #tpu.memory_space<vmem>>, vector<128x128xf32>,
    %c0_i32_7 = arith.constant 0 : i32
    %12 = arith.cmpi eq, %arg1, %c0_i32_7 : i32
    %13 = arith.extui %12 : i1 to i32
    %c0_i32_8 = arith.constant 0 : i32
    %14 = arith.cmpi ne, %13, %c0_i32_8 : i32
    scf.if %14 {
      %c0_9 = arith.constant 0 : index
      %c0_10 = arith.constant 0 : index
      %15 = vector.load %arg8[%c0_9, %c0_10] : memref<128x128xf32, #tpu.memory_space<vmem>>, vector<128x128xf32>
      %16 = arith.truncf %15 : vector<128x128xf32> to vector<128x128xbf16>
      %c0_11 = arith.constant 0 : index
      %c0_12 = arith.constant 0 : index
      %17 = vector.load %arg4[%c0_11, %c0_12] : memref<128x128xbf16, #tpu.memory_space<vmem>>, vector<128x128xbf16>
      %cst_13 = arith.constant dense<0.000000e+00> : vector<128x128xf32>
      %18 = tpu.matmul %16, %17, %cst_13 {dimension_numbers = #tpu.dot_dimension_numbers<[1], [0], [0], [1], [0, 0, 1, 1], [], []>} : vector<128x128xbf16>, vector<128x128xbf16>, vector<128x128xf32> -> vector<128x128xf32>
      %c0_14 = arith.constant 0 : index
      %c0_15 = arith.constant 0 : index
      %19 = vector.load %arg5[%c0_14, %c0_15] : memref<1x128xf32, #tpu.memory_space<vmem>>, vector<1x128xf32>
      %20 = vector.broadcast %19 : vector<1x128xf32> to vector<128x128xf32>
      %21 = arith.addf %18, %20 : vector<128x128xf32>
      %cst_16 = arith.constant 0.000000e+00 : f32
      %22 = vector.broadcast %cst_16 : f32 to vector<128x128xf32>
      %23 = arith.maximumf %21, %22 : vector<128x128xf32>
      %c128_i32_17 = arith.constant 128 : i32
      %24 = arith.muli %arg0, %c128_i32_17 : i32
      %25 = tpu.iota {dimensions = array<i32: 0>} : vector<128x1xi32>
      %26 = vector.broadcast %24 : i32 to vector<128x1xi32>
      %27 = arith.addi %26, %25 : vector<128x1xi32>
      %c16_i32 = arith.constant 16 : i32
      %28 = vector.broadcast %c16_i32 : i32 to vector<128x1xi32>
      %29 = arith.cmpi slt, %27, %28 : vector<128x1xi32>
      %cst_18 = arith.constant 0.000000e+00 : f32
      %30 = vector.shape_cast %29 : vector<128x1xi1> to vector<128x1xi1>
      %31 = vector.broadcast %30 : vector<128x1xi1> to vector<128x128xi1>
      %32 = vector.broadcast %cst_18 : f32 to vector<128x128xf32>
      %33 = arith.select %31, %23, %32 : vector<128x128xi1>, vector<128x128xf32>
      %cst_19 = arith.constant dense<0.000000e+00> : vector<128xf32>
      %34 = vector.multi_reduction <add>, %33, %cst_19 [0] : vector<128x128xf32> to vector<128xf32>
      %35 = vector.shape_cast %34 : vector<128xf32> to vector<1x128xf32>
      %36 = arith.mulf %33, %33 : vector<128x128xf32>
      %cst_20 = arith.constant dense<0.000000e+00> : vector<128xf32>
      %37 = vector.multi_reduction <add>, %36, %cst_20 [0] : vector<128x128xf32> to vector<128xf32>
      %38 = vector.shape_cast %37 : vector<128xf32> to vector<1x128xf32>
      %cst_21 = arith.constant 0.000000e+00 : f32
      %39 = vector.broadcast %cst_21 : f32 to vector<6x128xf32>
      %40 = tpu.concatenate %35, %38, %39 in 0 : vector<1x128xf32>, vector<1x128xf32>, vector<6x128xf32> -> vector<8x128xf32>
      %c0_22 = arith.constant 0 : index
      %c0_23 = arith.constant 0 : index
      %41 = vector.load %arg7[%c0_22, %c0_23] : memref<8x128xf32, #tpu.memory_space<vmem>>, vector<8x128xf32>
      tpu.vector_store %arg7[%c0_22, %c0_23], %40 {strides = array<i32>} : memref<8x128xf32, #tpu.memory_space<vmem>>, vector<8x128xf32>,
      %42 = arith.truncf %33 : vector<128x128xf32> to vector<128x128xbf16>
      %c0_24 = arith.constant 0 : index
      %c0_25 = arith.constant 0 : index
      %43 = vector.load %arg6[%c0_24, %c0_25] : memref<128x128xbf16, #tpu.memory_space<vmem>>, vector<128x128xbf16>
      tpu.vector_store %arg6[%c0_24, %c0_25], %42 {strides = array<i32>} : memref<128x128xbf16, #tpu.memory_space<vmem>>, vector<128x128xbf16>,
    } else {
    }
    return
  }
  func.func @transform_0(%arg0: i32, %arg1: i32) -> (i32, i32) {
    %c0_i32 = arith.constant 0 : i32
    return %arg0, %arg1 : i32, i32
  }
  func.func @transform_1(%arg0: i32, %arg1: i32) -> (i32, i32) {
    %c0_i32 = arith.constant 0 : i32
    %c0_i32_0 = arith.constant 0 : i32
    %c0_i32_1 = arith.constant 0 : i32
    return %c0_i32, %c0_i32_0 : i32, i32
  }
  func.func @transform_2(%arg0: i32, %arg1: i32) -> (i32, i32) {
    %c0_i32 = arith.constant 0 : i32
    %c0_i32_0 = arith.constant 0 : i32
    %c0_i32_1 = arith.constant 0 : i32
    return %c0_i32, %c0_i32_0 : i32, i32
  }
  func.func @transform_3(%arg0: i32, %arg1: i32) -> (i32, i32) {
    %c0_i32 = arith.constant 0 : i32
    %c0_i32_0 = arith.constant 0 : i32
    %c0_i32_1 = arith.constant 0 : i32
    return %c0_i32, %c0_i32_0 : i32, i32
  }
  func.func @transform_4(%arg0: i32, %arg1: i32) -> (i32, i32) {
    %c0_i32 = arith.constant 0 : i32
    %c0_i32_0 = arith.constant 0 : i32
    return %arg0, %c0_i32 : i32, i32
  }
  func.func @transform_5(%arg0: i32, %arg1: i32) -> (i32, i32) {
    %c0_i32 = arith.constant 0 : i32
    %c0_i32_0 = arith.constant 0 : i32
    return %arg0, %c0_i32 : i32, i32
  }
}

</mosaic_0001>

<bundles_post_ra>
// kernel: tpu_custom_call.1
= control target key start
LH: loop header
LB: loop body
LE: loop exit
PB: predicated region body
PF: predicated region fallthrough
CT: control target
= control target key end

     0   :  { %11 = vsyncpa [#allocation4], 0  ;;  %s1200_s0 = inlined_call_operand.hbm [shape: bf16[128,128], index: 0, kind: input, shape index: {}]   ;;  %s1201_s1 = inlined_call_operand.hbm [shape: bf16[128,128], index: 1, kind: input, shape index: {}]   ;;  %s1202_s2 = inlined_call_operand.hbm [shape: bf16[128,128], index: 2, kind: input, shape index: {}]   ;;  %s1203_s3 = inlined_call_operand.vmem [shape: f32[1,128], index: 3, kind: input, shape index: {}]   ;;  %s1204_s4 = inlined_call_operand.hbm [shape: bf16[128,128], index: 4, kind: output, shape index: {0}]   ;;  %s1205_s5 = inlined_call_operand.hbm [shape: f32[8,128], index: 5, kind: output, shape index: {1}]  }
   0x1   :  { %12 = vsyncpa [#allocation7], 0 }
   0x2   :  { %13 = vsyncpa [#allocation5], 0 }
   0x3   :  { %14 = vsyncpa [#allocation11], 0  ;;  %s1132_s18 = smov [#allocation6]   ;;  %s1133_s20 = smov [#allocation3]  }
   0x4   :  { %s32_s19 = sshll.u32 %s1132_s18, 4  ;;  %s20_s21 = sshll.u32 %s1133_s20, 4  ;;  %s33_s19 = int_to_ptr.vmem [resolvable:$true] %s32_s19  ;;  %s21_s21 = int_to_ptr.vmem [resolvable:$true] %s20_s21 }
   0x5   :  { %s1032_s22 = scalar_lea.vmem %s33_s19, 1024  ;;  %p1037_p1 = scmp.lt.s32.totalorder %s33_s19, %s33_s19 }
   0x6   :  { %p1033_p0 = scmp.ne.s32.totalorder %s33_s19, %s1032_s22  ;;  %p1038_p2 = scmp.lt.s32.totalorder %s1032_s22, %s1032_s22 }
   0x8   :  { %p1039_p3 = por %p1038_p2, %p1037_p1 }
   0xa   :  { %p1040_p4 = pnand %p1039_p3, %p1033_p0 }
   0xc   :  { %1043 = shalt.err (!%p1040_p4)
}
   0xd   :  { %s1134_s23 = smov 64   ;;  %s1135_s24 = smov 4  }
   0xe   :  { %38 = dma.hbm_to_vmem [thread:$0]  %s1201_s1, 1024, %s33_s19, [#allocation7], %s1134_s23, %s1134_s23, %s1135_s24  }
   0xf   :  { %s1052_s27 = scalar_lea.vmem %s21_s21, 1024  ;;  %p1057_p6 = scmp.lt.s32.totalorder %s21_s21, %s21_s21 }
  0x10   :  { %p1053_p5 = scmp.ne.s32.totalorder %s21_s21, %s1052_s27  ;;  %p1058_p7 = scmp.lt.s32.totalorder %s1052_s27, %s1052_s27 }
  0x12   :  { %p1059_p8 = por %p1058_p7, %p1057_p6 }
  0x14   :  { %p1060_p9 = pnand %p1059_p8, %p1053_p5 }
  0x16   :  { %1063 = shalt.err (!%p1060_p9)
}
  0x17   :  { %26 = dma.hbm_to_vmem [thread:$0]  %s1200_s0, 1024, %s21_s21, [#allocation4], %s1134_s23, %s1134_s23, %s1135_s24  }
  0x18   :  { %s1136_s30 = smov [#allocation8]  }
  0x19   :  { %s44_s6 = sshll.u32 %s1136_s30, 4  ;;  %s45_s6 = int_to_ptr.vmem [resolvable:$true] %s44_s6 }
  0x1a   :  { %s1072_s7 = scalar_lea.vmem %s45_s6, 1024  ;;  %p1077_p11 = scmp.lt.s32.totalorder %s45_s6, %s45_s6 }
  0x1b   :  { %p1073_p10 = scmp.ne.s32.totalorder %s45_s6, %s1072_s7  ;;  %p1078_p12 = scmp.lt.s32.totalorder %s1072_s7, %s1072_s7 }
  0x1d   :  { %p1079_p13 = por %p1078_p12, %p1077_p11 }
  0x1f   :  { %p1080_p0 = pnand %p1079_p13, %p1073_p10 }
  0x21   :  { %1083 = shalt.err (!%p1080_p0)
}
  0x22   :  { %50 = dma.hbm_to_vmem [thread:$0]  %s1202_s2, 1024, %s45_s6, [#allocation7], %s1134_s23, %s1134_s23, %s1135_s24  }
  0x23   :  { %1124 = dma.done.wait [#allocation4], 1024  }
  0x24   :  { %1125 = vsyncadd [#allocation4], 4294966272 }
  0x25   :  { %1126 = dma.done.wait [#allocation7], 2048  }
  0x26   :  { %1127 = vsyncadd [#allocation7], 4294965248  ;;  %v1000_v0 = vld [vmem:[#allocation6 + $0x38] sm:$0xff]   ;;  %v1001_v1 = vld [vmem:[#allocation6 + $0x30] sm:$0xff]   ;;  %v1137_v48 = vmov 0.0|0.0   ;;  %s1138_s9 = smov [#allocation9]  }
  0x27   :  { %928 = vmatprep.subr.bf16.mxu0 %v1000_v0  ;;  %v1002_v2 = vld [vmem:[#allocation6 + $0x28] sm:$0xff]   ;;  %v1003_v3 = vld [vmem:[#allocation6 + $0x20] sm:$0xff]   ;;  %v1004_v5 = vld [vmem:[#allocation6 + $0x18] sm:$0xff]   ;;  %v875_v49 = vcombine.low %v1137_v48, %v1137_v48  ;;  %v876_v50 = vcombine.high %v1137_v48, %v1137_v48  ;;  %s819_s10 = sshll.u32 %s1138_s9, 4  ;;  %s820_s10 = int_to_ptr.vmem [resolvable:$true] %s819_s10 }
  0x28   :  { %929 = vmatpush3.bf16.msra.mxu0 %v1000_v0  ;;  %v1008_v4 = vld [vmem:[#allocation3] sm:$0xff]   ;;  %v1005_v6 = vld [vmem:[#allocation6 + $0x10] sm:$0xff]   ;;  %v1016_v7 = vld [vmem:[#allocation8 + $0x38] sm:$0xff]   ;;  %p1089_p2 = scmp.lt.s32.totalorder %s820_s10, %s820_s10 }
  0x29   :  { %930 = vmatprep.subr.bf16.mxu0 %v1001_v1  ;;  %944 = vmatprep.mubr.bf16.mxu0 %v1008_v4  ;;  %v1017_v8 = vld [vmem:[#allocation8 + $0x30] sm:$0xff]   ;;  %v1006_v9 = vld [vmem:[#allocation6 + $0x8] sm:$0xff]   ;;  %v1007_v11 = vld [vmem:[#allocation6] sm:$0xff]   ;;  %800 = vst [vmem:[#allocation9 + $0x8] sm:$0xf] %v875_v49 }
  0x2a   :  { %960 = vmatprep.subr.bf16.mxu1 %v1016_v7  ;;  %v1018_v10 = vld [vmem:[#allocation8 + $0x28] sm:$0xff]   ;;  %v1019_v12 = vld [vmem:[#allocation8 + $0x20] sm:$0xff]   ;;  %v1020_v13 = vld [vmem:[#allocation8 + $0x18] sm:$0xff]   ;;  %801 = vst [vmem:[#allocation9 + $0xc] sm:$0xf] %v876_v50 }
  0x2b   :  { %961 = vmatpush3.bf16.msra.mxu1 %v1016_v7  ;;  %v1009_v14 = vld [vmem:[#allocation3 + $0x8] sm:$0xff]   ;;  %v1010_v15 = vld [vmem:[#allocation3 + $0x10] sm:$0xff]   ;;  %v1011_v17 = vld [vmem:[#allocation3 + $0x18] sm:$0xff]   ;;  %802 = vst [vmem:[#allocation9 + $0x10] sm:$0xf] %v875_v49 }
  0x2c   :  { %931 = vmatpush3.bf16.msra.mxu0 %v1001_v1  ;;  %962 = vmatprep.subr.bf16.mxu1 %v1017_v8  ;;  %v1021_v16 = vld [vmem:[#allocation8 + $0x10] sm:$0xff]   ;;  %v1012_v18 = vld [vmem:[#allocation3 + $0x20] sm:$0xff]   ;;  %v1013_v19 = vld [vmem:[#allocation3 + $0x28] sm:$0xff]   ;;  %803 = vst [vmem:[#allocation9 + $0x14] sm:$0xf] %v876_v50 }
  0x2d   :  { %932 = vmatprep.subr.bf16.mxu0 %v1002_v2  ;;  %v1014_v20 = vld [vmem:[#allocation3 + $0x30] sm:$0xff]   ;;  %v1015_v21 = vld [vmem:[#allocation3 + $0x38] sm:$0xff]   ;;  %v1022_v22 = vld [vmem:[#allocation8 + $0x8] sm:$0xff]   ;;  %804 = vst [vmem:[#allocation9 + $0x18] sm:$0xf] %v875_v49 }
  0x2e   :  { %v1023_v23 = vld [vmem:[#allocation8] sm:$0xff]   ;;  %805 = vst [vmem:[#allocation9 + $0x1c] sm:$0xf] %v876_v50  ;;  %806 = vst [vmem:[#allocation9 + $0x20] sm:$0xf] %v875_v49 }
  0x2f   :  { %963 = vmatpush3.bf16.msra.mxu1 %v1017_v8  ;;  %807 = vst [vmem:[#allocation9 + $0x24] sm:$0xf] %v876_v50  ;;  %808 = vst [vmem:[#allocation9 + $0x28] sm:$0xf] %v875_v49  ;;  %v864_v52 = vld [vmem:[%s1203_s3] ss:$0 sm:$0xff] }
  0x30   :  { %933 = vmatpush3.bf16.msra.mxu0 %v1002_v2  ;;  %964 = vmatprep.subr.bf16.mxu1 %v1018_v10  ;;  %809 = vst [vmem:[#allocation9 + $0x2c] sm:$0xf] %v876_v50  ;;  %810 = vst [vmem:[#allocation9 + $0x30] sm:$0xf] %v875_v49  ;;  %s1084_s3 = scalar_lea.vmem %s820_s10, 1024 }
  0x31   :  { %934 = vmatprep.subr.bf16.mxu0 %v1003_v3  ;;  %811 = vst [vmem:[#allocation9 + $0x34] sm:$0xf] %v876_v50  ;;  %812 = vst [vmem:[#allocation9 + $0x38] sm:$0xf] %v875_v49  ;;  %p1085_p1 = scmp.ne.s32.totalorder %s820_s10, %s1084_s3  ;;  %p1090_p3 = scmp.lt.s32.totalorder %s1084_s3, %s1084_s3 }
  0x32   :  { %813 = vst [vmem:[#allocation9 + $0x3c] sm:$0xf] %v876_v50 }
  0x33   :  { %965 = vmatpush3.bf16.msra.mxu1 %v1018_v10  ;;  %p1091_p4 = por %p1090_p3, %p1089_p2 }
  0x34   :  { %935 = vmatpush3.bf16.msra.mxu0 %v1003_v3  ;;  %966 = vmatprep.subr.bf16.mxu1 %v1019_v12 }
  0x35   :  { %936 = vmatprep.subr.bf16.mxu0 %v1004_v5  ;;  %p1092_p5 = pnand %p1091_p4, %p1085_p1 }
  0x37   :  { %967 = vmatpush3.bf16.msra.mxu1 %v1019_v12 }
  0x38   :  { %937 = vmatpush3.bf16.msra.mxu0 %v1004_v5  ;;  %968 = vmatprep.subr.bf16.mxu1 %v1020_v13 }
  0x39   :  { %938 = vmatprep.subr.bf16.mxu0 %v1005_v6 }
  0x3b   :  { %969 = vmatpush3.bf16.msra.mxu1 %v1020_v13 }
  0x3c   :  { %939 = vmatpush3.bf16.msra.mxu0 %v1005_v6  ;;  %970 = vmatprep.subr.bf16.mxu1 %v1021_v16 }
  0x3d   :  { %940 = vmatprep.subr.bf16.mxu0 %v1006_v9 }
  0x3f   :  { %971 = vmatpush3.bf16.msra.mxu1 %v1021_v16 }
  0x40   :  { %941 = vmatpush3.bf16.msra.mxu0 %v1006_v9  ;;  %972 = vmatprep.subr.bf16.mxu1 %v1022_v22 }
  0x41   :  { %942 = vmatprep.subr.bf16.mxu0 %v1007_v11 }
  0x43   :  { %973 = vmatpush3.bf16.msra.mxu1 %v1022_v22 }
  0x44   :  { %943 = vmatpush3.bf16.msra.mxu0 %v1007_v11  ;;  %974 = vmatprep.subr.bf16.mxu1 %v1023_v23 }
  0x47   :  { %945 = vmatmul.mubr.bf16.vlgmr.msra.gmra.mxu0 %v1009_v14  ;;  %975 = vmatpush3.bf16.msra.mxu1 %v1023_v23 }
  0x48   :  { %948 = vmatprep.mubr.bf16.mxu0 %v1010_v15 }
  0x4f   :  { %949 = vmatmul.mubr.bf16.gmra.mxu0 %v1011_v17 }
  0x50   :  { %952 = vmatprep.mubr.bf16.mxu0 %v1012_v18 }
  0x57   :  { %953 = vmatmul.mubr.bf16.gmra.mxu0 %v1013_v19 }
  0x58   :  { %956 = vmatprep.mubr.bf16.mxu0 %v1014_v20 }
  0x5f   :  { %957 = vmatmul.mubr.bf16.gmra.mxu0 %v1015_v21 }
 0x107   :  { %v946_v24 = vpop.f32.mrf.mxu0 }
 0x109   :  { %v266_v25 = vpop.f32.mrf.mxu0 }
 0x10b   :  { %v947_v26 = vpop.f32.mrf.mxu0 }
 0x10c   :  { %v381_v29 = vpack.c.bf16 %v947_v26, %v946_v24 }
 0x10d   :  { %v269_v27 = vpop.f32.mrf.mxu0 }
 0x10e   :  { %v380_v28 = vpack.c.bf16 %v269_v27, %v266_v25 }
 0x10f   :  { %v950_v30 = vpop.f32.mrf.mxu0 }
 0x110   :  { %976 = vmatprep.mubr.bf16.mxu1 %v380_v28 }
 0x111   :  { %v282_v31 = vpop.f32.mrf.mxu0  ;;  %977 = vmatmul.mubr.bf16.vlgmr.msra.gmra.mxu1 %v381_v29 }
 0x113   :  { %v951_v32 = vpop.f32.mrf.mxu0 }
 0x114   :  { %v383_v35 = vpack.c.bf16 %v951_v32, %v950_v30 }
 0x115   :  { %v285_v33 = vpop.f32.mrf.mxu0 }
 0x116   :  { %v382_v34 = vpack.c.bf16 %v285_v33, %v282_v31 }
 0x117   :  { %v954_v36 = vpop.f32.mrf.mxu0 }
 0x118   :  { %980 = vmatprep.mubr.bf16.mxu1 %v382_v34 }
 0x119   :  { %v298_v37 = vpop.f32.mrf.mxu0  ;;  %981 = vmatmul.mubr.bf16.gmra.mxu1 %v383_v35 }
 0x11b   :  { %v955_v38 = vpop.f32.mrf.mxu0 }
 0x11c   :  { %v385_v41 = vpack.c.bf16 %v955_v38, %v954_v36 }
 0x11d   :  { %v301_v39 = vpop.f32.mrf.mxu0 }
 0x11e   :  { %v384_v40 = vpack.c.bf16 %v301_v39, %v298_v37 }
 0x11f   :  { %v958_v42 = vpop.f32.mrf.mxu0 }
 0x120   :  { %984 = vmatprep.mubr.bf16.mxu1 %v384_v40 }
 0x121   :  { %v314_v43 = vpop.f32.mrf.mxu0  ;;  %985 = vmatmul.mubr.bf16.gmra.mxu1 %v385_v41 }
 0x123   :  { %v959_v44 = vpop.f32.mrf.mxu0 }
 0x124   :  { %v387_v47 = vpack.c.bf16 %v959_v44, %v958_v42 }
 0x125   :  { %v317_v45 = vpop.f32.mrf.mxu0 }
 0x126   :  { %v386_v46 = vpack.c.bf16 %v317_v45, %v314_v43 }
 0x128   :  { %988 = vmatprep.mubr.bf16.mxu1 %v386_v46 }
 0x129   :  { %989 = vmatmul.mubr.bf16.gmra.mxu1 %v387_v47 }
 0x1d1   :  { %v978_v51 = vpop.f32.mrf.mxu1 }
 0x1d3   :  { %v493_v53 = vpop.f32.mrf.mxu1 }
 0x1d4   :  { %v494_v54 = vadd.f32 %v864_v52, %v493_v53 }
 0x1d5   :  { %v979_v55 = vpop.f32.mrf.mxu1 }
 0x1d6   :  { %v556_v57 = vmax.f32 %v494_v54, 0.0 }
 0x1d7   :  { %v496_v56 = vpop.f32.mrf.mxu1 }
 0x1d8   :  { %v497_v58 = vadd.f32 %v864_v52, %v496_v56  ;;  %v692_v62 = vmul.f32 %v556_v57, %v556_v57 }
 0x1d9   :  { %v982_v59 = vpop.f32.mrf.mxu1 }
 0x1da   :  { %v557_v60 = vmax.f32 %v497_v58, 0.0 }
 0x1db   :  { %v509_v61 = vpop.f32.mrf.mxu1 }
 0x1dc   :  { %v671_v63 = vadd.f32 %v557_v60, %v556_v57  ;;  %v693_v0 = vmul.f32 %v557_v60, %v557_v60  ;;  %v894_v1 = vpack.c.bf16 %v557_v60, %v556_v57 }
 0x1dd   :  { %v983_v2 = vpop.f32.mrf.mxu1 }
 0x1de   :  { %v686_v3 = vrot.slane %v671_v63, 4  ;;  %v708_v4 = vadd.f32 %v693_v0, %v692_v62  ;;  %895 = vst [vmem:[#allocation9] sm:$0xff] %v894_v1  }
 0x1df   :  { %v512_v5 = vpop.f32.mrf.mxu1 }
 0x1e0   :  { %1095 = shalt.err (!%p1092_p5)
}
 0x1e1   :  { %825 = dma.vmem_to_hbm [thread:$0]  %s820_s10, 1024, %s1204_s4, [#allocation5], %s1134_s23, %s1134_s23, %s1135_s24   ;;  %v687_v6 = vadd.f32 %v686_v3, %v671_v63  ;;  %v723_v7 = vrot.slane %v708_v4, 4  ;;  %v986_v8 = vpop.f32.mrf.mxu1  ;;  %vm729_vm0 = vcmask 1040384   ;;  %vm731_vm1 = vcmask 1041408  }
 0x1e2   :  { %s1139_s13 = smov [#allocation10]  }
 0x1e3   :  { %v688_v9 = vrot.slane %v687_v6, 2  ;;  %v724_v10 = vadd.f32 %v723_v7, %v708_v4  ;;  %v525_v11 = vpop.f32.mrf.mxu1  ;;  %s832_s14 = sshll.u32 %s1139_s13, 4  ;;  %s833_s14 = int_to_ptr.vmem [resolvable:$true] %s832_s14 }
 0x1e4   :  { %s1104_s4 = scalar_lea.vmem %s833_s14, 128  ;;  %p1109_p7 = scmp.lt.s32.totalorder %s833_s14, %s833_s14 }
 0x1e5   :  { %v689_v12 = vadd.f32 %v688_v9, %v687_v6  ;;  %v725_v13 = vrot.slane %v724_v10, 2  ;;  %v987_v14 = vpop.f32.mrf.mxu1  ;;  %p1105_p6 = scmp.ne.s32.totalorder %s833_s14, %s1104_s4  ;;  %p1110_p8 = scmp.lt.s32.totalorder %s1104_s4, %s1104_s4 }
 0x1e7   :  { %v690_v15 = vrot.slane %v689_v12, 1  ;;  %v726_v16 = vadd.f32 %v725_v13, %v724_v10  ;;  %v528_v17 = vpop.f32.mrf.mxu1  ;;  %p1111_p9 = por %p1110_p8, %p1109_p7 }
 0x1e9   :  { %v727_v18 = vrot.slane %v726_v16, 1  ;;  %v990_v19 = vpop.f32.mrf.mxu1  ;;  %v691_v20 = vadd.f32 %v690_v15, %v689_v12  ;;  %p1112_p10 = pnand %p1111_p9, %p1105_p6 }
 0x1eb   :  { %v728_v21 = vadd.f32 %v727_v18, %v726_v16  ;;  %v541_v22 = vpop.f32.mrf.mxu1 }
 0x1ed   :  { %v730_v23 = vsel %vm729_vm0, %v691_v20, %v728_v21  ;;  %v991_v24 = vpop.f32.mrf.mxu1 }
 0x1ee   :  { %v732_v25 = vsel %vm731_vm1, %v730_v23, 0.0 }
 0x1ef   :  { %733 = vst [vmem:[#allocation10] sm:$0xff] %v732_v25  ;;  %v544_v26 = vpop.f32.mrf.mxu1 }
 0x1f0   :  { %1115 = shalt.err (!%p1112_p10)
}
 0x1f1   :  { %835 = dma.vmem_to_hbm [thread:$0]  %s833_s14, 128, %s1205_s5, [#allocation11]  }
 0x1f2   :  { %1128 = dma.done.wait [#allocation5], 1024  }
 0x1f3   :  { %1129 = vsyncadd [#allocation5], 4294966272 }
 0x1f4   :  { %1130 = dma.done.wait [#allocation11], 128  }
 0x1f5   :  { %1131 = vsyncadd [#allocation11], 4294967168 }
 0x1f6   :  { %842 = vsyncpa [#allocation4], 1 }
 0x1f7   :  { %843 = vsyncpa [#allocation7], 1 }
 0x1f8   :  { %844 = vsyncpa [#allocation5], 1 }
 0x1f9   :  { %845 = vsyncpa [#allocation11], 1 }

</bundles_post_ra>
